<compile_context>
chip_gen: v6e
topology: v6e:2x2x1
jax: 0.10.0
libtpu: 0.0.40
codegen_flags: <defaults>
</compile_context>

<pallas_src>
import functools
import math

import jax
import jax.numpy as jnp
from jax.experimental import pallas as pl
from jax.experimental.pallas import tpu as pltpu


# ----------------------------- Pallas kernel --------------------------------

def _normalize_kernel(x_ref, o_ref, *, scale, shift):
    # y = ((x + 1)/2 - mean)/std  ==  x * scale + shift   (folded affine).
    # Upcast to f32 so sub-f32 inputs (bf16) match the reference math.
    x = x_ref[...].astype(jnp.float32)
    o_ref[...] = (x * scale + shift).astype(o_ref.dtype)


def _round_up(v, m):
    return ((v + m - 1) // m) * m


# ------------------------------- wrapper -------------------------------------

def normalize_to_mnist(
    x,
    mean=0.1307,
    std=0.3081,
    *,
    tile_m=4096,            # rows per tile: 2 MiB f32 tiles, fits every gen's scoped VMEM
    lanes=128,
    min_pallas_elems=1 << 20,  # below this, a fused XLA elementwise op is strictly faster
    alias_input=False,      # set True only when the caller donates x
):
    """Elementwise ((x+1)/2 - mean)/std via a tiled, lane-dense Pallas kernel."""
    if not jnp.issubdtype(x.dtype, jnp.floating):
        raise TypeError("normalize_to_mnist requires a floating-point input dtype")

    scale = float(0.5 / std)
    shift = float((0.5 - mean) / std)

    orig_shape = x.shape
    dtype = x.dtype
    n = math.prod(orig_shape)
    if n == 0:
        return x

    # Small-input fast path: pallas_call launch + reshape overhead dwarfs the
    # useful HBM traffic at this scale; let XLA fuse the affine op.
    if n < min_pallas_elems:
        y = x.astype(jnp.float32) * scale + shift
        return y.astype(dtype)

    # Lane-dense (rows, 128) view.  ravel/reshape are free for contiguous arrays.
    flat = jnp.ravel(x)
    rem = n % lanes
    if rem:
        # Fallback: only <=127 elements of padding (and a matching tail slice).
        flat = jnp.pad(flat, (0, lanes - rem))
    rows = flat.shape[0] // lanes
    x2 = flat.reshape(rows, lanes)

    # Tile rows: big enough to amortize ~0.35us/step, capped so the grid has
    # >=2 steps (feeds both v7x TensorCores), sublane-aligned to 8.
    tm = max(8, min(tile_m, _round_up(pl.cdiv(rows, 2), 8)))
    grid = (pl.cdiv(rows, tm),)   # ragged last block is masked by Pallas

    kern = functools.partial(_normalize_kernel, scale=scale, shift=shift)
    bytes_per_elem = jnp.dtype(dtype).itemsize

    out2 = pl.pallas_call(
        kern,
        out_shape=jax.ShapeDtypeStruct((rows, lanes), dtype),
        grid_spec=pltpu.PrefetchScalarGridSpec(
            num_scalar_prefetch=0,
            grid=grid,
            in_specs=[pl.BlockSpec((tm, lanes), lambda i: (i, 0))],
            out_specs=pl.BlockSpec((tm, lanes), lambda i: (i, 0)),
        ),
        compiler_params=pltpu.CompilerParams(
            dimension_semantics=("parallel",),
        ),
        cost_estimate=pl.CostEstimate(
            flops=2 * n,
            transcendentals=0,
            bytes_accessed=2 * n * bytes_per_elem,
        ),
        input_output_aliases=({0: 0} if alias_input else {}),
    )(x2)

    out = out2.reshape(-1)
    if rem:
        out = out[:n]
    return out.reshape(orig_shape)


# --------------------------------- main ---------------------------------------

if __name__ == "__main__":
    key = jax.random.PRNGKey(0)
    # MNIST-like NCHW input in [-1, 1] (what the module expects to un-scale).
    x = jax.random.uniform(key, (2, 1, 28, 28), jnp.float32, minval=-1.0, maxval=1.0)

    mean, std = 0.1307, 0.3081
    ref = (((x + 1.0) / 2.0) - mean) / std

    # Force the Pallas path even for this small demo input.
    fwd_pallas = jax.jit(functools.partial(normalize_to_mnist, min_pallas_elems=0))
    out = fwd_pallas(x)
    jax.block_until_ready(out)

    assert out.shape == x.shape, out.shape
    assert out.dtype == x.dtype, out.dtype
    assert bool(jnp.all(jnp.isfinite(out)))
    assert jnp.allclose(out, ref, atol=1e-5, rtol=1e-5)

    # Default path (small-input fused-XLA fast path) must agree as well.
    out_fast = jax.jit(normalize_to_mnist)(x)
    jax.block_until_ready(out_fast)
    assert jnp.allclose(out_fast, ref, atol=1e-5, rtol=1e-5)

    print("KERNEL_OK")
</pallas_src>

<mosaic_0001>
module attributes {stable_mosaic.version = 11 : i64} {
  func.func @_normalize_kernel(%arg0: i32, %arg1: memref<8x128xf32, #tpu.memory_space<vmem>>, %arg2: memref<8x128xf32, #tpu.memory_space<vmem>>) attributes {dimension_semantics = [#tpu.dimension_semantics<parallel>], iteration_bounds = array<i64: 2>, scalar_prefetch = 0 : i64, scratch_operands = 0 : i64, tpu.core_type = #tpu.core_type<tc>, window_params = [{transform_indices = @transform_0, window_bounds = array<i64: 8, 128>}, {transform_indices = @transform_1, window_bounds = array<i64: 8, 128>}]} {
    %c0 = arith.constant 0 : index
    %c0_0 = arith.constant 0 : index
    %0 = vector.load %arg1[%c0, %c0_0] : memref<8x128xf32, #tpu.memory_space<vmem>>, vector<8x128xf32>
    %cst = arith.constant 1.6228497 : f32
    %1 = vector.broadcast %cst : f32 to vector<8x128xf32>
    %2 = arith.mulf %0, %1 : vector<8x128xf32>
    %cst_1 = arith.constant 1.19863677 : f32
    %3 = vector.broadcast %cst_1 : f32 to vector<8x128xf32>
    %4 = arith.addf %2, %3 : vector<8x128xf32>
    %c0_2 = arith.constant 0 : index
    %c0_3 = arith.constant 0 : index
    %5 = vector.load %arg2[%c0_2, %c0_3] : memref<8x128xf32, #tpu.memory_space<vmem>>, vector<8x128xf32>
    tpu.vector_store %arg2[%c0_2, %c0_3], %4 {strides = array<i32>} : memref<8x128xf32, #tpu.memory_space<vmem>>, vector<8x128xf32>,
    return
  }
  func.func @transform_0(%arg0: i32) -> (i32, i32) {
    %c0_i32 = arith.constant 0 : i32
    %c0_i32_0 = arith.constant 0 : i32
    return %arg0, %c0_i32 : i32, i32
  }
  func.func @transform_1(%arg0: i32) -> (i32, i32) {
    %c0_i32 = arith.constant 0 : i32
    %c0_i32_0 = arith.constant 0 : i32
    return %arg0, %c0_i32 : i32, i32
  }
}

</mosaic_0001>

<bundles_post_ra>
// kernel: normalize_to_mnist.1
= control target key start
LH: loop header
LB: loop body
LE: loop exit
PB: predicated region body
PF: predicated region fallthrough
CT: control target
= control target key end

     0   :  { %s190_s6 = smov 0   ;;  %s210_s0 = inlined_call_operand.vmem [shape: f32[13,128], index: 0, kind: input, shape index: {}]   ;;  %s211_s1 = inlined_call_operand.vmem [shape: f32[13,128], index: 1, kind: output, shape index: {}]  }
   0x1 LB: > { %s169_s7 = sadd.s32 4294967295, %s192_s6   ;;  %p173_p0 = scmp.ge.s32.totalorder %s192_s6, 1  ;;  %s192_s6 = sphi %s190_s6, %s11_s6  }
   0x2   : > { %p86_p1 = scmp.lt.s32.totalorder %s192_s6, 3 }
   0x4   : > { %p87_p2 = pnand %p173_p0, %p86_p1 }
   0x5   : > { %p104_p3 = scmp.lt.s32.totalorder (!%p87_p2), %s169_s7, 1 }
   0x6   : > { %90 = sbr.rel (%p87_p2) target bundleno = 20 (0x14), region = 24 }
   0xb   : > { %s213_s7 = smov (!%p104_p3, %s169_s7), 1 }
   0xc   : > { %s174_s8 = sshll.u32 %s213_s7, 3 }
   0xd   : > { %s107_s11 = scalar_lea.vmem %s210_s0, %s174_s8  ;;  %s111_s14 = scalar_lea.vmem %s211_s1, %s174_s8 }
   0xe   : > { %v112_v0 = vld [vmem:[%s107_s11] sm:$0xff] }
   0xf   : > { %v113_v1 = vmul.f32 1.6228497, %v112_v0 }
  0x11   : > { %v114_v2 = vadd.f32 1.1986368, %v113_v1 }
  0x13   : > { %115 = vst [vmem:[%s111_s14] sm:$0xff] %v114_v2 }
  0x14 PF: > { %s11_s6 = sadd.s32 1, %s192_s6  }
  0x15   : > { %p8_p4 = scmp.ge.s32.totalorder %s11_s6, 4  }
  0x17   :  { %10 = sbr.rel (!%p8_p4) target bundleno = 1 (0x1), region = 54 }

</bundles_post_ra>
